<compile_context>
chip_gen: v7x
topology: tpu7x:2x2x1
jax: 0.10.0
libtpu: 0.0.40
codegen_flags: <defaults>
</compile_context>

<pallas_src>
import functools

import jax
import jax.numpy as jnp
from jax.experimental import pallas as pl
from jax.experimental.pallas import tpu as pltpu

TM_LANES = 1024  # lane-axis (M) tile for non-BN convs


# --------------------------------------------------------------------------
# Pallas kernels
# --------------------------------------------------------------------------

def _conv_fused_kernel(*refs, use_bn, leaky, has_res):
    """Fused conv-as-matmul + (bias | training-mode BN) + LeakyReLU + residual.

    refs order: patches (K, M), weights (Cout, K), a (Cout, 1),
                [beta (Cout, 1) if use_bn], [residual (Cout, M) if has_res],
                out (Cout, M)
    """
    idx = 0
    p_ref = refs[idx]; idx += 1
    w_ref = refs[idx]; idx += 1
    a_ref = refs[idx]; idx += 1
    if use_bn:
        b_ref = refs[idx]; idx += 1
    if has_res:
        r_ref = refs[idx]; idx += 1
    o_ref = refs[idx]

    # (Cout, K) @ (K, M) -> (Cout, M): M (large) on lanes -> lane-dense output.
    y = jnp.dot(w_ref[...], p_ref[...], preferred_element_type=jnp.float32)

    if use_bn:
        # training-mode BatchNorm: batch stats, biased variance, eps=1e-5,
        # computed entirely in VMEM (single grid step covers all of M).
        mean = jnp.mean(y, axis=1, keepdims=True)
        var = jnp.mean((y - mean) ** 2, axis=1, keepdims=True)
        scale = a_ref[...] * jax.lax.rsqrt(var + 1e-5)
        y = (y - mean) * scale + b_ref[...]
    else:
        y = y + a_ref[...]

    if leaky:
        y = jnp.where(y > 0, y, 0.1 * y)

    if has_res:
        y = y + r_ref[...]

    o_ref[...] = y


def conv_fused(patches, w_mat, a, b=None, residual=None, *, leaky, use_bn):
    """y^T = W @ patches with fused bias/BN/LeakyReLU/residual. Shapes:
       patches (K, M), w_mat (Cout, K), a/b (Cout,), residual (Cout, M)."""
    K, M = patches.shape
    Cout = w_mat.shape[0]

    if use_bn or (M % TM_LANES != 0):
        tm = M                      # single step: exact BN stats, zero tiling overhead
    else:
        tm = min(M, TM_LANES)       # >=2 steps where possible -> v7x megacore sharding
    grid = (M // tm,)

    in_specs = [
        pl.BlockSpec((K, tm), lambda j: (0, j)),
        pl.BlockSpec((Cout, K), lambda j: (0, 0)),
        pl.BlockSpec((Cout, 1), lambda j: (0, 0)),
    ]
    args = [patches, w_mat, a.reshape(Cout, 1)]
    if use_bn:
        in_specs.append(pl.BlockSpec((Cout, 1), lambda j: (0, 0)))
        args.append(b.reshape(Cout, 1))
    if residual is not None:
        in_specs.append(pl.BlockSpec((Cout, tm), lambda j: (0, j)))
        args.append(residual)

    return pl.pallas_call(
        functools.partial(_conv_fused_kernel, use_bn=use_bn, leaky=leaky,
                          has_res=residual is not None),
        out_shape=jax.ShapeDtypeStruct((Cout, M), jnp.float32),
        grid=grid,
        in_specs=in_specs,
        out_specs=pl.BlockSpec((Cout, tm), lambda j: (0, j)),
        compiler_params=pltpu.CompilerParams(dimension_semantics=("parallel",)),
    )(*args)


def _add_kernel(a_ref, b_ref, o_ref):
    o_ref[...] = a_ref[...] + b_ref[...]


def shortcut_add(a, b):
    """Fallback residual add (only used when the shortcut cannot be fused
    into the preceding conv). Operates lane-dense on (C, B*H*W)."""
    sh = a.shape
    C = sh[0]
    a2 = a.reshape(C, -1)
    b2 = b.reshape(C, -1)
    out = pl.pallas_call(
        _add_kernel,
        out_shape=jax.ShapeDtypeStruct(a2.shape, jnp.float32),
    )(a2, b2)
    return out.reshape(sh)


def _yolo_kernel(p_ref, o_ref, *, stride, grid_size, anchors_scaled):
    # p: (B, bbox, A, G*G) — G*G on lanes (lane-dense), offsets/anchors built
    # in-kernel from iotas / static floats (no dense side inputs).
    p = p_ref[...]
    shape = p.shape
    attr = jax.lax.broadcasted_iota(jnp.int32, shape, 1)
    a_idx = jax.lax.broadcasted_iota(jnp.int32, shape, 2)
    g = jax.lax.broadcasted_iota(jnp.int32, shape, 3).astype(jnp.float32)

    inv_g = 1.0 / grid_size                       # grid_size is a power of 2 -> exact
    gy = jnp.floor(g * inv_g)
    gx = g - gy * grid_size

    aw = [float(w) for (w, _) in anchors_scaled]
    ah = [float(h) for (_, h) in anchors_scaled]
    anc_w = jnp.full(shape, aw[-1], jnp.float32)
    anc_h = jnp.full(shape, ah[-1], jnp.float32)
    for k in range(len(aw) - 2, -1, -1):
        anc_w = jnp.where(a_idx == k, aw[k], anc_w)
        anc_h = jnp.where(a_idx == k, ah[k], anc_h)

    is_xy = attr < 2
    is_wh = jnp.logical_and(attr >= 2, attr < 4)

    off = jnp.where(attr == 0, gx, gy)
    anc = jnp.where(attr == 2, anc_w, anc_h)

    sig = jax.nn.sigmoid(p)
    e = jnp.exp(jnp.where(is_wh, p, 0.0))         # masked: no inf in discarded rows

    box_xy = (sig + off) * stride
    box_wh = e * anc * stride
    o_ref[...] = jnp.where(is_xy, box_xy, jnp.where(is_wh, box_wh, sig))


def yolo_head(x_cbhw, inp_dim, anchors, num_classes):
    """Reproduces Darknet.detection_preprocess. x_cbhw: (A*bbox, B, G, G).
    Returns (B, G*G*A, bbox)."""
    C, B, G, _ = x_cbhw.shape
    bbox = 5 + num_classes
    A = len(anchors)
    GG = G * G
    stride = inp_dim // G

    # channel c = a*bbox + attr  ->  (B, bbox, A, GG), GG lane-dense
    pred = jnp.transpose(x_cbhw.reshape(A, bbox, B, GG), (2, 1, 0, 3))
    anchors_scaled = tuple((float(aw) / stride, float(ah) / stride) for aw, ah in anchors)

    out = pl.pallas_call(
        functools.partial(_yolo_kernel, stride=float(stride), grid_size=float(G),
                          anchors_scaled=anchors_scaled),
        out_shape=jax.ShapeDtypeStruct((B, bbox, A, GG), jnp.float32),
    )(pred)

    # (B, bbox, A, GG) -> (B, GG, A, bbox) -> (B, N, bbox)  with n = g*A + a
    return jnp.transpose(out, (0, 3, 2, 1)).reshape(B, GG * A, bbox)


# --------------------------------------------------------------------------
# JAX glue
# --------------------------------------------------------------------------

def _up2_axis(x, axis):
    # nn.Upsample(scale_factor=2, mode='bilinear') semantics (align_corners=False)
    L = x.shape[axis]
    first = jax.lax.slice_in_dim(x, 0, 1, axis=axis)
    last = jax.lax.slice_in_dim(x, L - 1, L, axis=axis)
    am1 = jnp.concatenate([first, jax.lax.slice_in_dim(x, 0, L - 1, axis=axis)], axis=axis)
    ap1 = jnp.concatenate([jax.lax.slice_in_dim(x, 1, L, axis=axis), last], axis=axis)
    even = 0.25 * am1 + 0.75 * x
    odd = 0.75 * x + 0.25 * ap1
    out = jnp.stack([even, odd], axis=axis + 1)
    new_shape = list(x.shape)
    new_shape[axis] = 2 * L
    return out.reshape(new_shape)


def bilinear_up2(x_cbhw):
    # TODO(synk): 2x bilinear upsample kept as a JAX stencil (exact PyTorch semantics).
    return _up2_axis(_up2_axis(x_cbhw, 2), 3)


def im2col_cbhw(x, k, stride, pad):
    """x: (Cin, B, H, W) -> patches (Cin*k*k, B*Ho*Wo), K ordered (ci, dy, dx)
    to match PyTorch's weight.reshape(Cout, Cin*k*k)."""
    Cin, B, H, W = x.shape
    Ho = (H + 2 * pad - k) // stride + 1
    Wo = (W + 2 * pad - k) // stride + 1
    if k == 1 and stride == 1 and pad == 0:
        return x.reshape(Cin, B * H * W), Ho, Wo
    # TODO(synk): 3x3 patch matrix is still materialized in HBM by XLA (k*k-fold
    # read amplification); acceptable at these sizes.
    xp = jnp.pad(x, ((0, 0), (0, 0), (pad, pad), (pad, pad)))
    cols = []
    for dy in range(k):
        for dx in range(k):
            sl = xp[:, :, dy::stride, :][:, :, :Ho, :]
            sl = sl[:, :, :, dx::stride][:, :, :, :Wo]
            cols.append(sl)
    patches = jnp.stack(cols, axis=1)              # (Cin, k*k, B, Ho, Wo)
    return patches.reshape(Cin * k * k, B * Ho * Wo), Ho, Wo


# --------------------------------------------------------------------------
# Synthetic darknet config (stands in for parse_cfg; no file I/O)
# --------------------------------------------------------------------------

ANCHORS_STR = '10,13, 16,30, 33,23, 30,61, 62,45, 59,119'


def make_blocks():
    return [
        {'type': 'net', 'height': '32', 'width': '32', 'channels': '3'},
        {'type': 'convolutional', 'batch_normalize': '1', 'filters': '8', 'size': '3',
         'stride': '1', 'pad': '1', 'activation': 'leaky'},
        {'type': 'convolutional', 'batch_normalize': '1', 'filters': '16', 'size': '3',
         'stride': '2', 'pad': '1', 'activation': 'leaky'},
        {'type': 'convolutional', 'batch_normalize': '1', 'filters': '16', 'size': '1',
         'stride': '1', 'pad': '1', 'activation': 'leaky'},
        {'type': 'shortcut', 'from': '-2', 'activation': 'linear'},
        {'type': 'convolutional', 'filters': '21', 'size': '1', 'stride': '1',
         'pad': '1', 'activation': 'linear'},
        {'type': 'yolo', 'mask': '0,1,2', 'anchors': ANCHORS_STR, 'classes': '2', 'num': '6'},
        {'type': 'route', 'layers': '-3'},
        {'type': 'convolutional', 'batch_normalize': '1', 'filters': '8', 'size': '1',
         'stride': '1', 'pad': '1', 'activation': 'leaky'},
        {'type': 'upsample', 'stride': '2'},
        {'type': 'route', 'layers': '-1, 0'},
        {'type': 'convolutional', 'batch_normalize': '1', 'filters': '16', 'size': '3',
         'stride': '1', 'pad': '1', 'activation': 'leaky'},
        {'type': 'convolutional', 'filters': '21', 'size': '1', 'stride': '1',
         'pad': '1', 'activation': 'linear'},
        {'type': 'yolo', 'mask': '3,4,5', 'anchors': ANCHORS_STR, 'classes': '2', 'num': '6'},
    ]


# --------------------------------------------------------------------------
# Darknet model (Pallas-backed)
# --------------------------------------------------------------------------

class DarknetPallas:
    def __init__(self, blocks, key):
        self.blocks = blocks
        self.net_info = blocks[0]
        self.params = {}

        # which layer outputs are explicitly referenced later (route/shortcut
        # sources) — a conv output may only be fused with its following shortcut
        # if the *pre-add* value is never needed again.
        refs = set()
        for j, b in enumerate(blocks[1:]):
            if b['type'] == 'route':
                layers = [int(v) for v in b['layers'].split(',')]
                refs.add(j + layers[0])
                if len(layers) > 1:
                    refs.add(layers[1])
            elif b['type'] == 'shortcut':
                refs.add(j + int(b['from']))
        self._referenced = refs

        channels = 3
        filters = channels
        output_filters = []
        for i, block in enumerate(blocks[1:]):
            btype = block['type']
            if btype == 'convolutional':
                filters = int(block['filters'])
                k = int(block['size'])
                use_bn = 'batch_normalize' in block
                kk = jax.random.fold_in(key, i)
                w = 0.1 * jax.random.normal(jax.random.fold_in(kk, 0),
                                            (filters, channels, k, k), jnp.float32)
                p = {'w': w}
                if use_bn:
                    p['gamma'] = 1.0 + 0.1 * jax.random.normal(
                        jax.random.fold_in(kk, 1), (filters,), jnp.float32)
                    p['beta'] = 0.1 * jax.random.normal(
                        jax.random.fold_in(kk, 2), (filters,), jnp.float32)
                else:
                    p['b'] = 0.1 * jax.random.normal(
                        jax.random.fold_in(kk, 3), (filters,), jnp.float32)
                self.params[i] = p
            elif btype == 'route':
                layers = [int(v) for v in block['layers'].split(',')]
                layers[0] = i + layers[0]
                if len(layers) == 1:
                    filters = output_filters[layers[0]]
                else:
                    filters = output_filters[layers[0]] + output_filters[layers[1]]
            # upsample / shortcut / yolo keep the previous `filters`
            output_filters.append(filters)
            channels = filters

    def _conv_block(self, x_c, i, block, residual=None):
        p = self.params[i]
        k = int(block['size'])
        stride = int(block['stride'])
        pad = (k - 1) // 2
        use_bn = 'batch_normalize' in block
        leaky = block['activation'] == 'leaky'

        Cin, B = x_c.shape[0], x_c.shape[1]
        Cout = p['w'].shape[0]

        patches, Ho, Wo = im2col_cbhw(x_c, k, stride, pad)         # (K, M)
        w_mat = p['w'].reshape(Cout, Cin * k * k)                  # (Cout, K)

        if use_bn:
            a, b = p['gamma'], p['beta']
        else:
            a, b = p['b'], None

        res2 = None if residual is None else residual.reshape(Cout, -1)
        y = conv_fused(patches, w_mat, a, b, res2, leaky=leaky, use_bn=use_bn)
        return y.reshape(Cout, B, Ho, Wo)

    def forward(self, x_nchw):
        x = jnp.transpose(x_nchw.astype(jnp.float32), (1, 0, 2, 3))  # NCHW -> CBHW
        mods = self.blocks[1:]
        outputs = {}
        detections = None
        skip = set()
        for i, block in enumerate(mods):
            if i in skip:
                continue
            btype = block['type']
            if btype == 'convolutional':
                residual = None
                fuse_sc = False
                # fuse the following linear shortcut into this conv's epilogue
                if (i + 1 < len(mods) and mods[i + 1]['type'] == 'shortcut'
                        and mods[i + 1].get('activation', 'linear') == 'linear'
                        and i not in self._referenced):
                    src = i + 1 + int(mods[i + 1]['from'])
                    if src in outputs:
                        residual = outputs[src]
                        fuse_sc = True
                x = self._conv_block(x, i, block, residual=residual)
                outputs[i] = x
                if fuse_sc:
                    outputs[i + 1] = x
                    skip.add(i + 1)
            elif btype == 'upsample':
                x = bilinear_up2(x)
                outputs[i] = x
            elif btype == 'route':
                layers = [int(v) for v in block['layers'].split(',')]
                layers[0] = i + layers[0]
                if len(layers) == 1:
                    x = outputs[layers[0]]
                else:
                    x = jnp.concatenate([outputs[layers[0]], outputs[layers[1]]], axis=0)
                outputs[i] = x
            elif btype == 'shortcut':
                frm = int(block['from'])
                x = shortcut_add(outputs[i - 1], outputs[i + frm])
                outputs[i] = x
            elif btype == 'yolo':
                mask = [int(m) for m in block['mask'].split(',')]
                flat = [int(a) for a in block['anchors'].split(',')]
                anchors = [(flat[2 * m], flat[2 * m + 1]) for m in mask]
                inp_dim = int(self.net_info['height'])
                num_classes = int(block['classes'])
                det = yolo_head(x, inp_dim, anchors, num_classes)
                detections = det if detections is None else jnp.concatenate(
                    [detections, det], axis=1)
                outputs[i] = outputs[i - 1]
        return detections


# --------------------------------------------------------------------------

if __name__ == "__main__":
    key = jax.random.PRNGKey(0)
    blocks = make_blocks()
    model = DarknetPallas(blocks, jax.random.fold_in(key, 123))

    x = jax.random.normal(jax.random.fold_in(key, 999), (2, 3, 32, 32), jnp.float32)

    det = model.forward(x)
    det = jax.block_until_ready(det)

    # two yolo heads: 16x16x3 + 32x32x3 anchors, 5+2 attrs each
    assert det.shape == (2, 16 * 16 * 3 + 32 * 32 * 3, 7), det.shape
    print("KERNEL_OK")
</pallas_src>

<mosaic_0001>
module attributes {stable_mosaic.version = 11 : i64} {
  func.func @_conv_fused_kernel(%arg0: i32, %arg1: memref<27x2048xf32, #tpu.memory_space<vmem>>, %arg2: memref<8x27xf32, #tpu.memory_space<vmem>>, %arg3: memref<8x1xf32, #tpu.memory_space<vmem>>, %arg4: memref<8x1xf32, #tpu.memory_space<vmem>>, %arg5: memref<8x2048xf32, #tpu.memory_space<vmem>>) attributes {dimension_semantics = [#tpu.dimension_semantics<parallel>], iteration_bounds = array<i64: 1>, scalar_prefetch = 0 : i64, scratch_operands = 0 : i64, tpu.core_type = #tpu.core_type<tc>, window_params = [{transform_indices = @transform_0, window_bounds = array<i64: 27, 2048>}, {pipeline_mode = #tpu.pipeline_mode<synchronous>, transform_indices = @transform_1, window_bounds = array<i64: 8, 27>}, {pipeline_mode = #tpu.pipeline_mode<synchronous>, transform_indices = @transform_2, window_bounds = array<i64: 8, 1>}, {pipeline_mode = #tpu.pipeline_mode<synchronous>, transform_indices = @transform_3, window_bounds = array<i64: 8, 1>}, {transform_indices = @transform_4, window_bounds = array<i64: 8, 2048>}]} {
    %c0 = arith.constant 0 : index
    %c0_0 = arith.constant 0 : index
    %0 = vector.load %arg2[%c0, %c0_0] : memref<8x27xf32, #tpu.memory_space<vmem>>, vector<8x27xf32>
    %c0_1 = arith.constant 0 : index
    %c0_2 = arith.constant 0 : index
    %1 = vector.load %arg1[%c0_1, %c0_2] : memref<27x2048xf32, #tpu.memory_space<vmem>>, vector<27x2048xf32>
    %cst = arith.constant dense<0.000000e+00> : vector<8x2048xf32>
    %2 = tpu.matmul %0, %1, %cst {dimension_numbers = #tpu.dot_dimension_numbers<[1], [0], [0], [1], [0, 0, 1, 1], [], []>} : vector<8x27xf32>, vector<27x2048xf32>, vector<8x2048xf32> -> vector<8x2048xf32>
    %cst_3 = arith.constant dense<0.000000e+00> : vector<8xf32>
    %3 = vector.multi_reduction <add>, %2, %cst_3 [1] : vector<8x2048xf32> to vector<8xf32>
    %4 = vector.shape_cast %3 : vector<8xf32> to vector<8x1xf32>
    %cst_4 = arith.constant 2.048000e+03 : f32
    %5 = vector.broadcast %cst_4 : f32 to vector<8x1xf32>
    %6 = arith.divf %4, %5 : vector<8x1xf32>
    %7 = vector.broadcast %6 : vector<8x1xf32> to vector<8x2048xf32>
    %8 = arith.subf %2, %7 : vector<8x2048xf32>
    %9 = arith.mulf %8, %8 : vector<8x2048xf32>
    %cst_5 = arith.constant dense<0.000000e+00> : vector<8xf32>
    %10 = vector.multi_reduction <add>, %9, %cst_5 [1] : vector<8x2048xf32> to vector<8xf32>
    %11 = vector.shape_cast %10 : vector<8xf32> to vector<8x1xf32>
    %cst_6 = arith.constant 2.048000e+03 : f32
    %12 = vector.broadcast %cst_6 : f32 to vector<8x1xf32>
    %13 = arith.divf %11, %12 : vector<8x1xf32>
    %c0_7 = arith.constant 0 : index
    %c0_8 = arith.constant 0 : index
    %14 = vector.load %arg3[%c0_7, %c0_8] : memref<8x1xf32, #tpu.memory_space<vmem>>, vector<8x1xf32>
    %cst_9 = arith.constant 9.99999974E-6 : f32
    %15 = vector.broadcast %cst_9 : f32 to vector<8x1xf32>
    %16 = arith.addf %13, %15 : vector<8x1xf32>
    %17 = math.rsqrt %16 : vector<8x1xf32>
    %18 = arith.mulf %14, %17 : vector<8x1xf32>
    %19 = vector.broadcast %6 : vector<8x1xf32> to vector<8x2048xf32>
    %20 = arith.subf %2, %19 : vector<8x2048xf32>
    %21 = vector.broadcast %18 : vector<8x1xf32> to vector<8x2048xf32>
    %22 = arith.mulf %20, %21 : vector<8x2048xf32>
    %c0_10 = arith.constant 0 : index
    %c0_11 = arith.constant 0 : index
    %23 = vector.load %arg4[%c0_10, %c0_11] : memref<8x1xf32, #tpu.memory_space<vmem>>, vector<8x1xf32>
    %24 = vector.broadcast %23 : vector<8x1xf32> to vector<8x2048xf32>
    %25 = arith.addf %22, %24 : vector<8x2048xf32>
    %cst_12 = arith.constant 0.000000e+00 : f32
    %26 = vector.broadcast %cst_12 : f32 to vector<8x2048xf32>
    %27 = arith.cmpf ogt, %25, %26 : vector<8x2048xf32>
    %cst_13 = arith.constant 1.000000e-01 : f32
    %28 = vector.broadcast %cst_13 : f32 to vector<8x2048xf32>
    %29 = arith.mulf %28, %25 : vector<8x2048xf32>
    %30 = arith.select %27, %25, %29 : vector<8x2048xi1>, vector<8x2048xf32>
    %c0_14 = arith.constant 0 : index
    %c0_15 = arith.constant 0 : index
    %31 = vector.load %arg5[%c0_14, %c0_15] : memref<8x2048xf32, #tpu.memory_space<vmem>>, vector<8x2048xf32>
    tpu.vector_store %arg5[%c0_14, %c0_15], %30 {strides = array<i32>} : memref<8x2048xf32, #tpu.memory_space<vmem>>, vector<8x2048xf32>,
    return
  }
  func.func @transform_0(%arg0: i32) -> (i32, i32) {
    %c0_i32 = arith.constant 0 : i32
    %c0_i32_0 = arith.constant 0 : i32
    return %c0_i32, %arg0 : i32, i32
  }
  func.func @transform_1(%arg0: i32) -> (i32, i32) {
    %c0_i32 = arith.constant 0 : i32
    %c0_i32_0 = arith.constant 0 : i32
    %c0_i32_1 = arith.constant 0 : i32
    return %c0_i32, %c0_i32_0 : i32, i32
  }
  func.func @transform_2(%arg0: i32) -> (i32, i32) {
    %c0_i32 = arith.constant 0 : i32
    %c0_i32_0 = arith.constant 0 : i32
    %c0_i32_1 = arith.constant 0 : i32
    return %c0_i32, %c0_i32_0 : i32, i32
  }
  func.func @transform_3(%arg0: i32) -> (i32, i32) {
    %c0_i32 = arith.constant 0 : i32
    %c0_i32_0 = arith.constant 0 : i32
    %c0_i32_1 = arith.constant 0 : i32
    return %c0_i32, %c0_i32_0 : i32, i32
  }
  func.func @transform_4(%arg0: i32) -> (i32, i32) {
    %c0_i32 = arith.constant 0 : i32
    %c0_i32_0 = arith.constant 0 : i32
    return %c0_i32, %arg0 : i32, i32
  }
}

</mosaic_0001>

<bundles_post_ra>
// kernel: tpu_custom_call.1
= control target key start
LH: loop header
LB: loop body
LE: loop exit
PB: predicated region body
PF: predicated region fallthrough
CT: control target
= control target key end

     0   :  { %9 = vsyncpa [#allocation3], 0  ;;  %s1222_s0 = inlined_call_operand.hbm [shape: f32[27,2048], index: 0, kind: input, shape index: {}]   ;;  %s1223_s1 = inlined_call_operand.vmem [shape: f32[8,27], index: 1, kind: input, shape index: {}]   ;;  %s1224_s2 = inlined_call_operand.vmem [shape: f32[8,1], index: 2, kind: input, shape index: {}]   ;;  %s1225_s3 = inlined_call_operand.vmem [shape: f32[8,1], index: 3, kind: input, shape index: {}]   ;;  %s1226_s4 = inlined_call_operand.hbm [shape: f32[8,2048], index: 4, kind: output, shape index: {}]  }
   0x1   :  { %10 = vsyncpa [#allocation4], 0  ;;  %s1076_s15 = smov [#allocation2]   ;;  %s1028_s19 = scalar_lea.hbm %s1222_s0, 8192 }
   0x2   :  { %s16_s16 = sshll.u32 %s1076_s15, 4  ;;  %p1029_p0 = scmp.ne.s32.totalorder %s1222_s0, %s1028_s19  ;;  %s17_s16 = int_to_ptr.vmem [resolvable:$true] %s16_s16 }
   0x3   :  { %p1032_p1 = scmp.lt.u32.totalorder %s1028_s19, %s1222_s0 }
   0x5   :  { %p1034_p2 = pnand %p1032_p1, %p1029_p0 }
   0x7   :  { %1037 = shalt.err (!%p1034_p2)
}
   0x8   :  { %s1038_s24 = scalar_lea.vmem %s17_s16, 8192  ;;  %p1043_p4 = scmp.lt.s32.totalorder %s17_s16, %s17_s16 }
   0x9   :  { %p1039_p3 = scmp.ne.s32.totalorder %s17_s16, %s1038_s24  ;;  %p1044_p5 = scmp.lt.s32.totalorder %s1038_s24, %s1038_s24 }
   0xb   :  { %p1045_p6 = por %p1044_p5, %p1043_p4 }
   0xd   :  { %p1046_p7 = pnand %p1045_p6, %p1039_p3 }
   0xf   :  { %1049 = shalt.err (!%p1046_p7)
}
  0x10   :  { %s1077_s25 = smov 2048   ;;  %s1078_s26 = smov 128  }
  0x11   :  { %22 = dma.hbm_to_vmem [thread:$0]  %s1222_s0, 8192, %s17_s16, [#allocation3], %s1077_s25, %s1077_s25, %s1078_s26  }
  0x12   :  { %1072 = dma.done.wait [#allocation3], 8192  }
  0x13   :  { %1073 = vsyncadd [#allocation3], 4294959104  ;;  %v1079_v0 = vmov 0.0   ;;  %vm101_vm0 = vcmask 1042432   ;;  %vm1080_vm1 = vmmov 1   ;;  %v34_v2 = vld [vmem:[#allocation2 + $0x8] sm:$0xff] }
  0x14   :  { %214 = vmatprep.mubr.f32.mxu0 %v1079_v0  ;;  %285 = vmatprep.mubr.f32.mxu1 %v1079_v0  ;;  %vm1122_vm2 = vmpackc.low %vm101_vm0, %vm1080_vm1  ;;  %v50_v3 = vld [vmem:[#allocation2 + $0x88] sm:$0xff]  ;;  %v33_v4 = vld [vmem:[#allocation2] sm:$0xff]  ;;  %vm97_vm3 = vcmask 220160  }
  0x15   :  { %v937_v5 = vpack.c.bf16 %v50_v3, %v34_v2  ;;  %v49_v6 = vld [vmem:[#allocation2 + $0x80] sm:$0xff]  ;;  %v36_v7 = vld [vmem:[#allocation2 + $0x18] sm:$0xff]  ;;  %v66_v11 = vld [vmem:[#allocation2 + $0x108] sm:$0xff] }
  0x16   :  { %v52_v8 = vld [vmem:[#allocation2 + $0x98] sm:$0xff]  ;;  %v939_v9 = vpack.c.bf16 %v49_v6, %v33_v4  ;;  %v82_v12 = vld [vmem:[#allocation2 + $0x188] sm:$0x7]  ;;  %v35_v13 = vld [vmem:[#allocation2 + $0x10] sm:$0xff] }
  0x17   :  { %v947_v10 = vpack.c.bf16 %v52_v8, %v36_v7  ;;  %938 = vmatprep.subr.bf16.mxu0 %v937_v5  ;;  %v941_v14 = vpack.c.bf16 %v82_v12, %v66_v11  ;;  %v51_v15 = vld [vmem:[#allocation2 + $0x90] sm:$0xff]  ;;  %v65_v16 = vld [vmem:[#allocation2 + $0x100] sm:$0xff]  ;;  %v68_v20 = vld [vmem:[#allocation2 + $0x118] sm:$0xff] }
  0x18   :  { %v81_v17 = vld [vmem:[#allocation2 + $0x180] sm:$0x7]  ;;  %940 = vmatpush1.bf16.msra.mxu0 %v939_v9  ;;  %v949_v18 = vpack.c.bf16 %v51_v15, %v35_v13  ;;  %v84_v21 = vld [vmem:[#allocation2 + $0x198] sm:$0x7]  ;;  %v67_v23 = vld [vmem:[#allocation2 + $0x110] sm:$0xff] }
  0x19   :  { %948 = vmatprep.subr.bf16.mxu1 %v947_v10  ;;  %v944_v19 = vpack.c.bf16 %v81_v17, %v65_v16  ;;  %943 = vmatprep.subr.msk.bf16.mxu0 %vm1122_vm2, %v941_v14  ;;  %v951_v22 = vpack.c.bf16 %v84_v21, %v68_v20  ;;  %v83_v24 = vld [vmem:[#allocation2 + $0x190] sm:$0x7]  ;;  %v38_v25 = vld [vmem:[#allocation2 + $0x28] sm:$0xff]  ;;  %v1131_v26 = vld [vmem:[%s1223_s1] sm:$0xff] }
  0x1a   :  { %950 = vmatpush1.bf16.msra.mxu1 %v949_v18  ;;  %v954_v27 = vpack.c.bf16 %v83_v24, %v67_v23  ;;  %v54_v28 = vld [vmem:[#allocation2 + $0xa8] sm:$0xff]  ;;  %v37_v29 = vld [vmem:[#allocation2 + $0x20] sm:$0xff]  ;;  %v40_v32 = vld [vmem:[#allocation2 + $0x38] sm:$0xff] }
  0x1b   :  { %v53_v30 = vld [vmem:[#allocation2 + $0xa0] sm:$0xff]  ;;  %953 = vmatprep.subr.msk.bf16.mxu1 %vm1122_vm2, %v951_v22  ;;  %v957_v31 = vpack.c.bf16 %v54_v28, %v38_v25  ;;  %v56_v33 = vld [vmem:[#allocation2 + $0xb8] sm:$0xff]  ;;  %v70_v34 = vld [vmem:[#allocation2 + $0x128] sm:$0xff] }
  0x1c   :  { %946 = vmatpush1.bf16.msk.msra.mxu0 %vm1122_vm2, %v944_v19  ;;  %v959_v35 = vpack.c.bf16 %v53_v30, %v37_v29  ;;  %v967_v36 = vpack.c.bf16 %v56_v33, %v40_v32  ;;  %v86_v37 = vld [vmem:[#allocation2 + $0x1a8] sm:$0x7]  ;;  %v39_v38 = vld [vmem:[#allocation2 + $0x30] sm:$0xff]  ;;  %v69_v41 = vld [vmem:[#allocation2 + $0x120] sm:$0xff] }
  0x1d   :  { %v55_v39 = vld [vmem:[#allocation2 + $0xb0] sm:$0xff]  ;;  %958 = vmatprep.subr.bf16.mxu0 %v957_v31  ;;  %v961_v40 = vpack.c.bf16 %v86_v37, %v70_v34  ;;  %v85_v42 = vld [vmem:[#allocation2 + $0x1a0] sm:$0x7]  ;;  %v72_v43 = vld [vmem:[#allocation2 + $0x138] sm:$0xff] }
  0x1e   :  { %956 = vmatpush1.bf16.msk.msra.mxu1 %vm1122_vm2, %v954_v27  ;;  %v969_v44 = vpack.c.bf16 %v55_v39, %v39_v38  ;;  %v88_v45 = vld [vmem:[#allocation2 + $0x1b8] sm:$0x7]  ;;  %v71_v46 = vld [vmem:[#allocation2 + $0x130] sm:$0xff]  ;;  %v42_v49 = vld [vmem:[#allocation2 + $0x48] sm:$0xff]  ;;  %v964_v51 = vpack.c.bf16 %v85_v42, %v69_v41 }
  0x1f   :  { %915 = vmatmul.mubr.msk.f32.vlgmr.msra.gmra.mrb[0].mxu0 %vm97_vm3, %v1131_v26  ;;  %968 = vmatprep.subr.bf16.mxu1 %v967_v36  ;;  %v971_v47 = vpack.c.bf16 %v88_v45, %v72_v43  ;;  %v87_v48 = vld [vmem:[#allocation2 + $0x1b0] sm:$0x7]  ;;  %v58_v50 = vld [vmem:[#allocation2 + $0xc8] sm:$0xff]  ;;  %v44_v52 = vld [vmem:[#allocation2 + $0x58] sm:$0xff] }
  0x20   :  { %960 = vmatpush1.bf16.msra.mxu0 %v959_v35  ;;  %356 = vmatprep.mubr.f32.mxu0 %v1079_v0  ;;  %v60_v53 = vld [vmem:[#allocation2 + $0xd8] sm:$0xff]  ;;  %v977_v54 = vpack.c.bf16 %v58_v50, %v42_v49  ;;  %v41_v55 = vld [vmem:[#allocation2 + $0x40] sm:$0xff]  ;;  %v974_v57 = vpack.c.bf16 %v87_v48, %v71_v46  ;;  %v74_v58 = vld [vmem:[#allocation2 + $0x148] sm:$0xff] }
  0x21   :  { %918 = vmatmul.mubr.msk.f32.vlgmr.msra.gmra.mrb[0].mxu1 %vm97_vm3, %v1131_v26  ;;  %963 = vmatprep.subr.msk.bf16.mxu0 %vm1122_vm2, %v961_v40  ;;  %v57_v56 = vld [vmem:[#allocation2 + $0xc0] sm:$0xff]  ;;  %v90_v59 = vld [vmem:[#allocation2 + $0x1c8] sm:$0x7]  ;;  %v987_v60 = vpack.c.bf16 %v60_v53, %v44_v52  ;;  %v43_v61 = vld [vmem:[#allocation2 + $0x50] sm:$0xff] }
  0x22   :  { %970 = vmatpush1.bf16.msra.mxu1 %v969_v44  ;;  %427 = vmatprep.mubr.f32.mxu1 %v1079_v0  ;;  %v59_v62 = vld [vmem:[#allocation2 + $0xd0] sm:$0xff]  ;;  %v979_v63 = vpack.c.bf16 %v57_v56, %v41_v55  ;;  %v76_v2 = vld [vmem:[#allocation2 + $0x158] sm:$0xff]  ;;  %v981_v4 = vpack.c.bf16 %v90_v59, %v74_v58  ;;  %v73_v5 = vld [vmem:[#allocation2 + $0x140] sm:$0xff] }
  0x23   :  { %973 = vmatprep.subr.msk.bf16.mxu1 %vm1122_vm2, %v971_v47  ;;  %v92_v3 = vld [vmem:[#allocation2 + $0x1d8] sm:$0x7]  ;;  %v89_v6 = vld [vmem:[#allocation2 + $0x1c0] sm:$0x7]  ;;  %v989_v7 = vpack.c.bf16 %v59_v62, %v43_v61  ;;  %v46_v8 = vld [vmem:[#allocation2 + $0x68] sm:$0xff] }
  0x24   :  { %966 = vmatpush1.bf16.msk.msra.mxu0 %vm1122_vm2, %v964_v51  ;;  %v62_v9 = vld [vmem:[#allocation2 + $0xe8] sm:$0xff]  ;;  %v991_v10 = vpack.c.bf16 %v92_v3, %v76_v2  ;;  %v75_v11 = vld [vmem:[#allocation2 + $0x150] sm:$0xff]  ;;  %v984_v13 = vpack.c.bf16 %v89_v6, %v73_v5  ;;  %v48_v14 = vld [vmem:[#allocation2 + $0x78] sm:$0xff] }
  0x25   :  { %978 = vmatprep.subr.bf16.mxu0 %v977_v54  ;;  %v91_v12 = vld [vmem:[#allocation2 + $0x1d0] sm:$0x7]  ;;  %v64_v15 = vld [vmem:[#allocation2 + $0xf8] sm:$0xff]  ;;  %v997_v16 = vpack.c.bf16 %v62_v9, %v46_v8  ;;  %v45_v17 = vld [vmem:[#allocation2 + $0x60] sm:$0xff] }
  0x26   :  { %976 = vmatpush1.bf16.msk.msra.mxu1 %vm1122_vm2, %v974_v57  ;;  %v61_v18 = vld [vmem:[#allocation2 + $0xe0] sm:$0xff]  ;;  %v994_v19 = vpack.c.bf16 %v91_v12, %v75_v11  ;;  %v78_v20 = vld [vmem:[#allocation2 + $0x168] sm:$0xff]  ;;  %v1007_v22 = vpack.c.bf16 %v64_v15, %v48_v14  ;;  %v47_v23 = vld [vmem:[#allocation2 + $0x70] sm:$0xff] }
  0x27   :  { %921 = vmatmul.mubr.msk.f32.vlgmr.msra.gmra.mrb[2].mxu0 %vm97_vm3, %v1131_v26  ;;  %988 = vmatprep.subr.bf16.mxu1 %v987_v60  ;;  %v94_v21 = vld [vmem:[#allocation2 + $0x1e8] sm:$0x7]  ;;  %v63_v24 = vld [vmem:[#allocation2 + $0xf0] sm:$0xff]  ;;  %v999_v25 = vpack.c.bf16 %v61_v18, %v45_v17  ;;  %v80_v27 = vld [vmem:[#allocation2 + $0x178] sm:$0xff] }
  0x28   :  { %980 = vmatpush1.bf16.msra.mxu0 %v979_v63  ;;  %498 = vmatprep.mubr.f32.mxu0 %v1079_v0  ;;  %v96_v28 = vld [vmem:[#allocation2 + $0x1f8] sm:$0x7]  ;;  %v1001_v29 = vpack.c.bf16 %v94_v21, %v78_v20  ;;  %v77_v30 = vld [vmem:[#allocation2 + $0x160] sm:$0xff]  ;;  %v1009_v32 = vpack.c.bf16 %v63_v24, %v47_v23  ;;  %v79_v34 = vld [vmem:[#allocation2 + $0x170] sm:$0xff] }
  0x29   :  { %924 = vmatmul.mubr.msk.f32.vlgmr.msra.gmra.mrb[2].mxu1 %vm97_vm3, %v1131_v26  ;;  %983 = vmatprep.subr.msk.bf16.mxu0 %vm1122_vm2, %v981_v4  ;;  %v93_v31 = vld [vmem:[#allocation2 + $0x1e0] sm:$0x7]  ;;  %v1011_v33 = vpack.c.bf16 %v96_v28, %v80_v27  ;;  %v95_v35 = vld [vmem:[#allocation2 + $0x1f0] sm:$0x7] }
  0x2a   :  { %990 = vmatpush1.bf16.msra.mxu1 %v989_v7  ;;  %569 = vmatprep.mubr.f32.mxu1 %v1079_v0  ;;  %v1004_v36 = vpack.c.bf16 %v93_v31, %v77_v30  ;;  %v1014_v37 = vpack.c.bf16 %v95_v35, %v79_v34 }
  0x2b   :  { %993 = vmatprep.subr.msk.bf16.mxu1 %vm1122_vm2, %v991_v10 }
  0x2c   :  { %986 = vmatpush1.bf16.msk.msra.mxu0 %vm1122_vm2, %v984_v13 }
  0x2d   :  { %998 = vmatprep.subr.bf16.mxu0 %v997_v16 }
  0x2e   :  { %996 = vmatpush1.bf16.msk.msra.mxu1 %vm1122_vm2, %v994_v19 }
  0x2f   :  { %927 = vmatmul.mubr.msk.f32.vlgmr.msra.gmra.mrb[4].mxu0 %vm97_vm3, %v1131_v26  ;;  %1008 = vmatprep.subr.bf16.mxu1 %v1007_v22 }
  0x30   :  { %1000 = vmatpush1.bf16.msra.mxu0 %v999_v25  ;;  %640 = vmatprep.mubr.f32.mxu0 %v1079_v0 }
  0x31   :  { %930 = vmatmul.mubr.msk.f32.vlgmr.msra.gmra.mrb[4].mxu1 %vm97_vm3, %v1131_v26  ;;  %1003 = vmatprep.subr.msk.bf16.mxu0 %vm1122_vm2, %v1001_v29 }
  0x32   :  { %1010 = vmatpush1.bf16.msra.mxu1 %v1009_v32  ;;  %711 = vmatprep.mubr.f32.mxu1 %v1079_v0 }
  0x33   :  { %1013 = vmatprep.subr.msk.bf16.mxu1 %vm1122_vm2, %v1011_v33 }
  0x34   :  { %1006 = vmatpush1.bf16.msk.msra.mxu0 %vm1122_vm2, %v1004_v36 }
  0x36   :  { %1016 = vmatpush1.bf16.msk.msra.mxu1 %vm1122_vm2, %v1014_v37 }
  0x37   :  { %933 = vmatmul.mubr.msk.f32.vlgmr.msra.gmra.mrb[6].mxu0 %vm97_vm3, %v1131_v26 }
  0x39   :  { %936 = vmatmul.mubr.msk.f32.vlgmr.msra.gmra.mrb[6].mxu1 %vm97_vm3, %v1131_v26 }
  0xf2   :  { %v216_v38 = vpop.f32.mrb[0].mxu0 }
  0xf3   :  { %v218_v39 = vpop.f32.mrb[1].mxu0 }
  0xf4   :  { %v718_v40 = vadd.f32 %v218_v39, %v216_v38  ;;  %v287_v41 = vpop.f32.mrb[0].mxu1 }
  0xf5   :  { %v289_v0 = vpop.f32.mrb[1].mxu1 }
  0xf6   :  { %v719_v42 = vadd.f32 %v718_v40, %v287_v41 }
  0xf8   :  { %v720_v43 = vadd.f32 %v719_v42, %v289_v0 }
  0xfa   :  { %v358_v44 = vpop.f32.mrb[2].mxu0 }
  0xfb   :  { %v721_v45 = vadd.f32 %v720_v43, %v358_v44  ;;  %v360_v46 = vpop.f32.mrb[3].mxu0 }
  0xfc   :  { %v429_v47 = vpop.f32.mrb[2].mxu1 }
  0xfd   :  { %v722_v48 = vadd.f32 %v721_v45, %v360_v46  ;;  %v431_v1 = vpop.f32.mrb[3].mxu1 }
  0xff   :  { %v723_v49 = vadd.f32 %v722_v48, %v429_v47 }
 0x101   :  { %v724_v50 = vadd.f32 %v723_v49, %v431_v1 }
 0x102   :  { %v500_v51 = vpop.f32.mrb[4].mxu0 }
 0x103   :  { %v725_v52 = vadd.f32 %v724_v50, %v500_v51  ;;  %v502_v53 = vpop.f32.mrb[5].mxu0 }
 0x104   :  { %v571_v54 = vpop.f32.mrb[4].mxu1 }
 0x105   :  { %v726_v26 = vadd.f32 %v725_v52, %v502_v53  ;;  %v573_v55 = vpop.f32.mrb[5].mxu1  ;;  %v1081_v52 = vmov 0  }
 0x106   :  { %1024 = vset.pattern.permute.xlu1 %v1081_v52  ;;  %1025 = vset.pattern.permute.xlu0 %v1081_v52 }
 0x107   :  { %v727_v56 = vadd.f32 %v726_v26, %v571_v54 }
 0x109   :  { %v728_v57 = vadd.f32 %v727_v56, %v573_v55 }
 0x10a   :  { %v642_v58 = vpop.f32.mrb[6].mxu0 }
 0x10b   :  { %v729_v59 = vadd.f32 %v728_v57, %v642_v58  ;;  %v644_v60 = vpop.f32.mrb[7].mxu0 }
 0x10c   :  { %v713_v61 = vpop.f32.mrb[6].mxu1 }
 0x10d   :  { %v730_v62 = vadd.f32 %v729_v59, %v644_v60  ;;  %v715_v63 = vpop.f32.mrb[7].mxu1 }
 0x10f   :  { %v731_v2 = vadd.f32 %v730_v62, %v713_v61 }
 0x111   :  { %v732_v3 = vadd.f32 %v731_v2, %v715_v63 }
 0x113   :  { %733 = vadd.xlane.f32.xlu0 %v732_v3 }
 0x1a0   :  { %v734_v4 = vpop.xlane.xlu0 %733 }
 0x1a1   :  { %v736_v5 = vmul.f32 0.00048828125, %v734_v4 }
 0x1a3   :  { %v737_v6 = vsub.f32 %v216_v38, %v736_v5  ;;  %v738_v7 = vsub.f32 %v218_v39, %v736_v5  ;;  %v739_v8 = vsub.f32 %v287_v41, %v736_v5  ;;  %v740_v11 = vsub.f32 %v289_v0, %v736_v5 }
 0x1a4   :  { %v741_v12 = vsub.f32 %v358_v44, %v736_v5  ;;  %v742_v15 = vsub.f32 %v360_v46, %v736_v5  ;;  %v743_v18 = vsub.f32 %v429_v47, %v736_v5  ;;  %v744_v21 = vsub.f32 %v431_v1, %v736_v5 }
 0x1a5   :  { %v753_v9 = vmul.f32 %v737_v6, %v737_v6  ;;  %v754_v10 = vmul.f32 %v738_v7, %v738_v7  ;;  %v755_v13 = vmul.f32 %v739_v8, %v739_v8  ;;  %v756_v16 = vmul.f32 %v740_v11, %v740_v11 }
 0x1a6   :  { %v757_v19 = vmul.f32 %v741_v12, %v741_v12  ;;  %v758_v22 = vmul.f32 %v742_v15, %v742_v15  ;;  %v745_v24 = vsub.f32 %v500_v51, %v736_v5  ;;  %v759_v25 = vmul.f32 %v743_v18, %v743_v18 }
 0x1a7   :  { %v769_v14 = vadd.f32 %v754_v10, %v753_v9  ;;  %v746_v28 = vsub.f32 %v502_v53, %v736_v5  ;;  %v760_v29 = vmul.f32 %v744_v21, %v744_v21  ;;  %v747_v31 = vsub.f32 %v571_v54, %v736_v5 }
 0x1a8   :  { %v761_v32 = vmul.f32 %v745_v24, %v745_v24  ;;  %v748_v34 = vsub.f32 %v573_v55, %v736_v5  ;;  %v749_v37 = vsub.f32 %v642_v58, %v736_v5  ;;  %v750_v40 = vsub.f32 %v644_v60, %v736_v5  ;;  %v787_v55 = vld [vmem:[%s1224_s2] sm:$0xff]  ;;  %s1082_s2 = smov [#allocation5]  }
 0x1a9   :  { %v770_v17 = vadd.f32 %v769_v14, %v755_v13  ;;  %v762_v35 = vmul.f32 %v746_v28, %v746_v28  ;;  %v763_v38 = vmul.f32 %v747_v31, %v747_v31  ;;  %v751_v42 = vsub.f32 %v713_v61, %v736_v5  ;;  %v812_v58 = vld [vmem:[%s1225_s3] sm:$0xff]  ;;  %s1191_s3 = sshll.u32 %s1082_s2, 4  ;;  %s905_s3 = int_to_ptr.vmem [resolvable:$true] %s1191_s3 }
 0x1aa   :  { %v764_v41 = vmul.f32 %v748_v34, %v748_v34  ;;  %v765_v43 = vmul.f32 %v749_v37, %v749_v37  ;;  %v752_v45 = vsub.f32 %v715_v63, %v736_v5  ;;  %v766_v46 = vmul.f32 %v750_v40, %v750_v40  ;;  %s1050_s7 = scalar_lea.vmem %s905_s3, 2048  ;;  %p1055_p9 = scmp.lt.s32.totalorder %s905_s3, %s905_s3 }
 0x1ab   :  { %v771_v20 = vadd.f32 %v770_v17, %v756_v16  ;;  %v767_v48 = vmul.f32 %v751_v42, %v751_v42  ;;  %p1051_p8 = scmp.ne.s32.totalorder %s905_s3, %s1050_s7  ;;  %p1056_p10 = scmp.lt.s32.totalorder %s1050_s7, %s1050_s7 }
 0x1ac   :  { %v768_v49 = vmul.f32 %v752_v45, %v752_v45 }
 0x1ad   :  { %v772_v23 = vadd.f32 %v771_v20, %v757_v19  ;;  %p1057_p11 = por %p1056_p10, %p1055_p9 }
 0x1af   :  { %v773_v27 = vadd.f32 %v772_v23, %v758_v22  ;;  %p1058_p12 = pnand %p1057_p11, %p1051_p8 }
 0x1b1   :  { %v774_v30 = vadd.f32 %v773_v27, %v759_v25 }
 0x1b3   :  { %v775_v33 = vadd.f32 %v774_v30, %v760_v29 }
 0x1b5   :  { %v776_v36 = vadd.f32 %v775_v33, %v761_v32 }
 0x1b7   :  { %v777_v39 = vadd.f32 %v776_v36, %v762_v35 }
 0x1b9   :  { %v778_v0 = vadd.f32 %v777_v39, %v763_v38 }
 0x1bb   :  { %v779_v44 = vadd.f32 %v778_v0, %v764_v41 }
 0x1bd   :  { %v780_v47 = vadd.f32 %v779_v44, %v765_v43 }
 0x1bf   :  { %v781_v1 = vadd.f32 %v780_v47, %v766_v46 }
 0x1c1   :  { %v782_v50 = vadd.f32 %v781_v1, %v767_v48 }
 0x1c3   :  { %v783_v51 = vadd.f32 %v782_v50, %v768_v49 }
 0x1c5   :  { %784 = vadd.xlane.f32.xlu0 %v783_v51 }
 0x252   :  { %v785_v53 = vpop.xlane.xlu0 %784 }
 0x253   :  { %v786_v54 = vmul.f32 0.00048828125, %v785_v53 }
 0x255   :  { %v788_v26 = vadd.f32 1e-05, %v786_v54 }
 0x257   :  { %1026 = vrsqrt.f32 %v788_v26 }
 0x261   :  { %v1027_v56 = vpop.eup %1026 }
 0x262   :  { %v790_v57 = vmul.f32 %v1027_v56, %v787_v55 }
 0x264   :  { %793 = vperm.xlu1 %1024, %v790_v57  }
 0x268   :  { %815 = vperm.xlu1 %1024, %v812_v58  }
 0x2e3   :  { %v794_v59 = vpop.permute.xlu1 %793 }
 0x2e4   :  { %v796_v60 = vmul.f32 %v794_v59, %v737_v6  ;;  %v797_v61 = vmul.f32 %v794_v59, %v738_v7  ;;  %v798_v62 = vmul.f32 %v794_v59, %v739_v8  ;;  %v799_v63 = vmul.f32 %v794_v59, %v740_v11 }
 0x2e5   :  { %v800_v2 = vmul.f32 %v794_v59, %v741_v12  ;;  %v801_v3 = vmul.f32 %v794_v59, %v742_v15  ;;  %v802_v4 = vmul.f32 %v794_v59, %v743_v18  ;;  %v803_v5 = vmul.f32 %v794_v59, %v744_v21 }
 0x2e6   :  { %v804_v9 = vmul.f32 %v794_v59, %v745_v24  ;;  %v805_v10 = vmul.f32 %v794_v59, %v746_v28  ;;  %v806_v13 = vmul.f32 %v794_v59, %v747_v31  ;;  %v807_v14 = vmul.f32 %v794_v59, %v748_v34 }
 0x2e7   :  { %v808_v16 = vmul.f32 %v794_v59, %v749_v37  ;;  %v809_v17 = vmul.f32 %v794_v59, %v750_v40  ;;  %v810_v19 = vmul.f32 %v794_v59, %v751_v42  ;;  %v811_v20 = vmul.f32 %v794_v59, %v752_v45  ;;  %v816_v22 = vpop.permute.xlu1 %815 }
 0x2e8   :  { %v818_v23 = vadd.f32 %v816_v22, %v796_v60  ;;  %v819_v25 = vadd.f32 %v816_v22, %v797_v61  ;;  %v820_v27 = vadd.f32 %v816_v22, %v798_v62  ;;  %v821_v6 = vadd.f32 %v816_v22, %v799_v63 }
 0x2e9   :  { %v822_v7 = vadd.f32 %v816_v22, %v800_v2  ;;  %v823_v8 = vadd.f32 %v816_v22, %v801_v3  ;;  %v824_v11 = vadd.f32 %v816_v22, %v802_v4  ;;  %v825_v12 = vadd.f32 %v816_v22, %v803_v5 }
 0x2ea   :  { %v826_v15 = vadd.f32 %v816_v22, %v804_v9  ;;  %v827_v18 = vadd.f32 %v816_v22, %v805_v10  ;;  %v828_v21 = vadd.f32 %v816_v22, %v806_v13  ;;  %v829_v24 = vadd.f32 %v816_v22, %v807_v14 }
 0x2eb   :  { %v830_v28 = vadd.f32 %v816_v22, %v808_v16  ;;  %v831_v29 = vadd.f32 %v816_v22, %v809_v17  ;;  %v832_v30 = vadd.f32 %v816_v22, %v810_v19  ;;  %v833_v31 = vadd.f32 %v816_v22, %v811_v20 }
 0x2ec   :  { %vm834_vm4 = vcmp.gt.f32.partialorder %v818_v23, 0.0  ;;  %vm835_vm5 = vcmp.gt.f32.partialorder %v819_v25, 0.0  ;;  %vm836_vm6 = vcmp.gt.f32.partialorder %v820_v27, 0.0  ;;  %vm837_vm7 = vcmp.gt.f32.partialorder %v821_v6, 0.0 }
 0x2ed   :  { %vm838_vm8 = vcmp.gt.f32.partialorder %v822_v7, 0.0  ;;  %vm839_vm9 = vcmp.gt.f32.partialorder %v823_v8, 0.0  ;;  %vm840_vm10 = vcmp.gt.f32.partialorder %v824_v11, 0.0  ;;  %vm841_vm11 = vcmp.gt.f32.partialorder %v825_v12, 0.0 }
 0x2ee   :  { %vm842_vm12 = vcmp.gt.f32.partialorder %v826_v15, 0.0  ;;  %vm843_vm13 = vcmp.gt.f32.partialorder %v827_v18, 0.0  ;;  %vm844_vm14 = vcmp.gt.f32.partialorder %v828_v21, 0.0  ;;  %vm845_vm15 = vcmp.gt.f32.partialorder %v829_v24, 0.0 }
 0x2ef   :  { %vm846_vm0 = vcmp.gt.f32.partialorder %v830_v28, 0.0  ;;  %vm847_vm1 = vcmp.gt.f32.partialorder %v831_v29, 0.0  ;;  %vm848_vm2 = vcmp.gt.f32.partialorder %v832_v30, 0.0  ;;  %vm849_vm3 = vcmp.gt.f32.partialorder %v833_v31, 0.0 }
 0x2f0   :  { %v850_v32 = vmul.f32 0.1, %v818_v23  ;;  %v851_v33 = vmul.f32 0.1, %v819_v25  ;;  %v852_v34 = vmul.f32 0.1, %v820_v27 }
 0x2f1   :  { %v853_v35 = vmul.f32 0.1, %v821_v6  ;;  %v854_v36 = vmul.f32 0.1, %v822_v7  ;;  %v855_v37 = vmul.f32 0.1, %v823_v8 }
 0x2f2   :  { %v856_v38 = vmul.f32 0.1, %v824_v11  ;;  %v857_v39 = vmul.f32 0.1, %v825_v12  ;;  %v858_v40 = vmul.f32 0.1, %v826_v15  ;;  %v866_v41 = vsel %vm834_vm4, %v818_v23, %v850_v32 }
 0x2f3   :  { %v859_v0 = vmul.f32 0.1, %v827_v18  ;;  %v860_v42 = vmul.f32 0.1, %v828_v21  ;;  %v861_v43 = vmul.f32 0.1, %v829_v24  ;;  %v867_v44 = vsel %vm835_vm5, %v819_v25, %v851_v33 }
 0x2f4   :  { %882 = vst [vmem:[#allocation5] sm:$0xff] %v866_v41  ;;  %v862_v45 = vmul.f32 0.1, %v830_v28  ;;  %v863_v46 = vmul.f32 0.1, %v831_v29  ;;  %v868_v48 = vsel %vm836_vm6, %v820_v27, %v852_v34  ;;  %883 = vst [vmem:[#allocation5 + $0x8] sm:$0xff] %v867_v44  ;;  %v869_v49 = vsel %vm837_vm7, %v821_v6, %v853_v35 }
 0x2f5   :  { %v864_v47 = vmul.f32 0.1, %v832_v30  ;;  %v865_v1 = vmul.f32 0.1, %v833_v31  ;;  %v870_v50 = vsel %vm838_vm8, %v822_v7, %v854_v36  ;;  %v871_v51 = vsel %vm839_vm9, %v823_v8, %v855_v37  ;;  %884 = vst [vmem:[#allocation5 + $0x10] sm:$0xff] %v868_v48  ;;  %885 = vst [vmem:[#allocation5 + $0x18] sm:$0xff] %v869_v49 }
 0x2f6   :  { %v872_v52 = vsel %vm840_vm10, %v824_v11, %v856_v38  ;;  %v873_v53 = vsel %vm841_vm11, %v825_v12, %v857_v39  ;;  %v874_v54 = vsel %vm842_vm12, %v826_v15, %v858_v40  ;;  %v875_v26 = vsel %vm843_vm13, %v827_v18, %v859_v0  ;;  %886 = vst [vmem:[#allocation5 + $0x20] sm:$0xff] %v870_v50 }
 0x2f7   :  { %887 = vst [vmem:[#allocation5 + $0x28] sm:$0xff] %v871_v51  ;;  %v876_v55 = vsel %vm844_vm14, %v828_v21, %v860_v42  ;;  %v877_v56 = vsel %vm845_vm15, %v829_v24, %v861_v43  ;;  %v878_v57 = vsel %vm846_vm0, %v830_v28, %v862_v45  ;;  %v879_v58 = vsel %vm847_vm1, %v831_v29, %v863_v46 }
 0x2f8   :  { %888 = vst [vmem:[#allocation5 + $0x30] sm:$0xff] %v872_v52  ;;  %889 = vst [vmem:[#allocation5 + $0x38] sm:$0xff] %v873_v53  ;;  %v880_v59 = vsel %vm848_vm2, %v832_v30, %v864_v47  ;;  %v881_v60 = vsel %vm849_vm3, %v833_v31, %v865_v1 }
 0x2f9   :  { %890 = vst [vmem:[#allocation5 + $0x40] sm:$0xff] %v874_v54  ;;  %891 = vst [vmem:[#allocation5 + $0x48] sm:$0xff] %v875_v26 }
 0x2fa   :  { %892 = vst [vmem:[#allocation5 + $0x50] sm:$0xff] %v876_v55  ;;  %893 = vst [vmem:[#allocation5 + $0x58] sm:$0xff] %v877_v56 }
 0x2fb   :  { %894 = vst [vmem:[#allocation5 + $0x60] sm:$0xff] %v878_v57  ;;  %895 = vst [vmem:[#allocation5 + $0x68] sm:$0xff] %v879_v58 }
 0x2fc   :  { %896 = vst [vmem:[#allocation5 + $0x70] sm:$0xff] %v880_v59  ;;  %897 = vst [vmem:[#allocation5 + $0x78] sm:$0xff] %v881_v60 }
 0x2fd   :  { %1061 = shalt.err (!%p1058_p12)
}
 0x2fe   :  { %s1062_s10 = scalar_lea.hbm %s1226_s4, 2048 }
 0x2ff   :  { %p1063_p13 = scmp.ne.s32.totalorder %s1226_s4, %s1062_s10  ;;  %p1066_p0 = scmp.lt.u32.totalorder %s1062_s10, %s1226_s4 }
 0x301   :  { %p1068_p1 = pnand %p1066_p0, %p1063_p13 }
 0x303   :  { %1071 = shalt.err (!%p1068_p1)
}
 0x304   :  { %907 = dma.vmem_to_hbm [thread:$0]  %s905_s3, 2048, %s1226_s4, [#allocation4]  }
 0x305   :  { %1074 = dma.done.wait [#allocation4], 2048  }
 0x306   :  { %1075 = vsyncadd [#allocation4], 4294965248 }
 0x307   :  { %911 = vsyncpa [#allocation3], 1 }
 0x308   :  { %912 = vsyncpa [#allocation4], 1 }

</bundles_post_ra>
